<compile_context>
chip_gen: v7x
topology: tpu7x:2x2x1
jax: 0.10.0
libtpu: 0.0.40
codegen_flags: <defaults>
</compile_context>

<pallas_src>
import functools

import jax
import jax.numpy as jnp
from jax.experimental import pallas as pl
from jax.experimental.pallas import tpu as pltpu


def calc_padding(kernel_size, dilation, causal, stride=1):
    if causal:
        padding = (kernel_size - 1) * dilation + 1 - stride
    else:
        padding = ((kernel_size - 1) * dilation + 1 - stride) // 2
    return padding


def _round_up(x, m):
    return ((x + m - 1) // m) * m


def _cdiv(a, b):
    return -(-a // b)


def _dil_conv_glu_kernel(x_ref, tail_ref, w_ref, b_ref, o_ref,
                         carry_ref, slab_ref, *,
                         ks, dilation, halo, t_tile, c_in_p, c_out_blk):
    # x_ref:     (1, C_in_p, tT)           bf16  current time tile (reverse block order)
    # tail_ref:  (1, C_in_p, max(halo,1))  bf16  cols [nT*tT, nT*tT+halo) of x_pad
    # w_ref:     (1, 2*c_out_blk, ks*C_in_p) bf16 fused [W_l; W_g] (im2col-flattened)
    # b_ref:     (1, 2*c_out_blk, 1)       f32   fused bias
    # o_ref:     (1, c_out_blk, tT)        out dtype
    # carry_ref: (C_in_p, max(halo,1))     bf16 scratch: first `halo` cols of right-neighbour tile
    # slab_ref:  (ks*C_in_p, tT)           bf16 scratch: im2col slab
    j = pl.program_id(2)
    x_blk = x_ref[0]                                     # (C_in_p, tT)

    if halo > 0:
        # First (right-most) time tile of each (batch, chunk): halo comes from the tail.
        @pl.when(j == 0)
        def _init_carry():
            carry_ref[...] = tail_ref[0]

    # im2col straight into the slab (no staging window).  For tap k the window is
    # win[:, k*d : k*d + tT] where win = [x_blk | carry]; split into two stores.
    for k in range(ks):                                  # static unroll, KS is small
        off = k * dilation
        rows = pl.ds(k * c_in_p, c_in_p)
        if off == 0:
            slab_ref[rows, :] = x_blk
        else:
            slab_ref[rows, pl.ds(0, t_tile - off)] = x_blk[:, off:]
            slab_ref[rows, pl.ds(t_tile - off, off)] = carry_ref[:, :off]

    if halo > 0:
        # Save this tile's first `halo` columns for the next (earlier-in-time) tile.
        carry_ref[...] = x_blk[:, :halo]

    # One fused lane-dense MXU matmul: (2*Co_blk, K) @ (K, tT), f32 accumulation.
    h = jnp.dot(w_ref[0], slab_ref[...],
                preferred_element_type=jnp.float32) + b_ref[0]
    h_l = h[:c_out_blk]                                  # sublane split of the f32 acc
    h_g = h[c_out_blk:]
    # GLU gate via EUP: exp + approx reciprocal (both sit in the EUP slot).
    gate = pl.reciprocal(1.0 + jnp.exp(-h_g), approx=True)
    o_ref[0] = (h_l * gate).astype(o_ref.dtype)


def dil_conv_glu_1d(x, v, g, bias, dilation, *, t_tile_max=512, co_chunks=None,
                    compute_dtype=jnp.bfloat16,
                    vmem_limit_bytes=48 * 1024 * 1024):
    """Forward pass of DilConvGLU1D.

    x:    (B, C_in, T)               activations (NCT, PyTorch layout)
    v, g: weight-norm params of Conv1d(C_in, 2*C_out, KS, dilation):
          v (2*C_out, C_in, KS), g (2*C_out, 1, 1)
    bias: (2*C_out,)
    Returns (B, C_out, T_out), T_out = T + 2*p - (KS-1)*dilation, p = ((KS-1)*d)//2.

    t_tile_max: raise to 1024 on v6e for small-channel (HBM-bound) shapes.
    """
    B, C_in, T = x.shape
    two_co, _, ks = v.shape
    C_out = two_co // 2
    p = calc_padding(ks, dilation, causal=False)
    halo = (ks - 1) * dilation
    T_out = T + 2 * p - halo
    assert T_out >= 1

    # Weight-norm reparameterization (dim=0): w = g * v / ||v||_(in,ks)  (f32, tiny).
    v_norm = jnp.sqrt(jnp.sum(v * v, axis=(1, 2), keepdims=True))
    weight = g * v / v_norm                              # (2*C_out, C_in, KS)

    # ---- channel padding so im2col sublane stores are tile-aligned (bf16: 16). ----
    C_in_p = _round_up(C_in, 16)
    halo_w = max(halo, 1)
    K = ks * C_in_p

    # ---- output-channel chunking: gives v7x's 2nd TensorCore work when B == 1. ----
    if co_chunks is None:
        co_chunks = 2 if (B < 2 and C_out >= 256 and C_out % 16 == 0) else 1
    assert C_out % co_chunks == 0
    t_co = C_out // co_chunks
    assert co_chunks == 1 or t_co % 8 == 0

    # ---- balanced time tiling (lane axis), halo-safe, capped by a VMEM budget. ----
    bs = jnp.dtype(compute_dtype).itemsize
    out_bs = jnp.dtype(x.dtype).itemsize
    min_tT = max(128, _round_up(halo + 1, 128))          # carry needs halo < tT
    nT0 = _cdiv(T_out, max(t_tile_max, 128))
    tT = max(min_tT, _round_up(_cdiv(T_out, nT0), 128))

    def est_vmem(tt):
        return (2 * C_in_p * tt * bs                     # x tile, double-buffered
                + 2 * t_co * tt * out_bs                 # out tile, double-buffered
                + K * tt * bs                            # im2col slab scratch
                + C_in_p * halo_w * bs                   # carry scratch
                + 2 * C_in_p * halo_w * bs               # tail tile, double-buffered
                + 2 * (2 * t_co) * K * bs)               # weights (worst case 2 bufs)

    budget = int(0.8 * vmem_limit_bytes)
    while tT > min_tT and est_vmem(tT) > budget:
        tT -= 128
    # TODO(synk): for very large C or ks (slab blows the budget), switch to the
    # no-slab variant that accumulates ks shifted matmuls directly.
    nT = _cdiv(T_out, tT)
    T_grid = nT * tT

    # ---- single fused pad+cast of the activation (the only extra HBM pass). ----
    # TODO(synk): fold the left-pad/channel-pad/bf16 cast into the kernel (or
    # allow_input_fusion) to kill this extra HBM read/write of the activation.
    right = (T_grid + halo) - (T + p)                    # >= p
    x_pad = jnp.pad(x.astype(compute_dtype),
                    ((0, 0), (0, C_in_p - C_in), (p, right)))   # (B, C_in_p, T_grid+halo)
    if halo > 0:
        x_tail = x_pad[:, :, T_grid:T_grid + halo]       # (B, C_in_p, halo) tiny slice
    else:
        x_tail = jnp.zeros((B, C_in_p, 1), compute_dtype)

    # ---- weight prep: pad C_in, flatten taps into contraction, fuse [W_l; W_g]. ----
    w = jnp.pad(weight, ((0, 0), (0, C_in_p - C_in), (0, 0)))        # (2Co, C_in_p, KS)
    w_flat = jnp.transpose(w, (0, 2, 1)).reshape(two_co, K)          # col = k*C_in_p + c
    w_l = w_flat[:C_out].reshape(co_chunks, t_co, K)
    w_g = w_flat[C_out:].reshape(co_chunks, t_co, K)
    w_cat = jnp.concatenate([w_l, w_g], axis=1).astype(compute_dtype)  # (nCo, 2*t_co, K)
    b_l = bias[:C_out].reshape(co_chunks, t_co, 1)
    b_g = bias[C_out:].reshape(co_chunks, t_co, 1)
    b_cat = jnp.concatenate([b_l, b_g], axis=1).astype(jnp.float32)    # (nCo, 2*t_co, 1)

    kernel = functools.partial(_dil_conv_glu_kernel, ks=ks, dilation=dilation,
                               halo=halo, t_tile=tT, c_in_p=C_in_p, c_out_blk=t_co)

    def _call(single_buffer_consts):
        # Weights / bias are resident (constant or slow-changing index): a second
        # pipeline buffer is wasted VMEM, so request single-buffering if supported.
        if single_buffer_consts:
            w_spec = pl.BlockSpec((1, 2 * t_co, K), lambda b, c, j: (c, 0, 0),
                                  pipeline_mode=pl.Buffered(1))
            b_spec = pl.BlockSpec((1, 2 * t_co, 1), lambda b, c, j: (c, 0, 0),
                                  pipeline_mode=pl.Buffered(1))
        else:
            w_spec = pl.BlockSpec((1, 2 * t_co, K), lambda b, c, j: (c, 0, 0))
            b_spec = pl.BlockSpec((1, 2 * t_co, 1), lambda b, c, j: (c, 0, 0))
        return pl.pallas_call(
            kernel,
            out_shape=jax.ShapeDtypeStruct((B, C_out, T_grid), x.dtype),
            grid_spec=pltpu.PrefetchScalarGridSpec(
                num_scalar_prefetch=0,
                grid=(B, co_chunks, nT),
                in_specs=[
                    # time blocks visited right-to-left so carry_ref supplies the halo
                    pl.BlockSpec((1, C_in_p, tT), lambda b, c, j: (b, 0, nT - 1 - j)),
                    pl.BlockSpec((1, C_in_p, halo_w), lambda b, c, j: (b, 0, 0)),
                    w_spec,
                    b_spec,
                ],
                out_specs=pl.BlockSpec((1, t_co, tT),
                                       lambda b, c, j: (b, c, nT - 1 - j)),
                scratch_shapes=[
                    pltpu.VMEM((C_in_p, halo_w), compute_dtype),   # halo carry
                    pltpu.VMEM((K, tT), compute_dtype),            # im2col slab
                ],
            ),
            compiler_params=pltpu.CompilerParams(
                # batch & channel chunks feed megacore / both v7x TCs; time stays
                # sequential (halo carry dependence).
                dimension_semantics=("parallel", "parallel", "arbitrary"),
                vmem_limit_bytes=vmem_limit_bytes),
        )(x_pad, x_tail, w_cat, b_cat)

    try:
        out = _call(True)
    except Exception:  # pl.Buffered(1) unsupported on this jax/chip -> default buffering
        out = _call(False)

    return out[:, :, :T_out]


def make_params(key, in_ch, out_ch, ks):
    """Deterministic weight-norm Conv1d params (v, g, bias)."""
    k_v, k_b = jax.random.split(key)
    v = jax.random.normal(k_v, (out_ch * 2, in_ch, ks), dtype=jnp.float32) * 0.1
    # PyTorch weight_norm init: g = ||v|| over (in_ch, ks)  (dim=0 default).
    g = jnp.sqrt(jnp.sum(v * v, axis=(1, 2), keepdims=True))
    bias = jax.random.normal(k_b, (out_ch * 2,), dtype=jnp.float32) * 0.1
    return v, g, bias


def _reference(x, v, g, bias, dilation, padding):
    """Pure-XLA reference: weight-norm Conv1d (symmetric padding) + GLU.

    Inputs rounded to bf16 (exactly as the kernel sees them) but accumulated in f32,
    so the comparison is tight.
    """
    v_norm = jnp.sqrt(jnp.sum(v * v, axis=(1, 2), keepdims=True))
    weight = g * v / v_norm
    xc = x.astype(jnp.bfloat16).astype(jnp.float32)
    wc = weight.astype(jnp.bfloat16).astype(jnp.float32)
    y = jax.lax.conv_general_dilated(
        xc, wc, window_strides=(1,), padding=[(padding, padding)],
        rhs_dilation=(dilation,), dimension_numbers=("NCH", "OIH", "NCH"))
    y = y + bias.astype(jnp.float32)[None, :, None]
    co = weight.shape[0] // 2
    h_l, h_g = y[:, :co, :], y[:, co:, :]
    return (h_l * jax.nn.sigmoid(h_g)).astype(x.dtype)


if __name__ == "__main__":
    # Small shapes consistent with the module's forward.
    B, in_ch, out_ch, ks, df, T = 2, 4, 4, 3, 2, 16
    padding = calc_padding(ks, df, causal=False)          # ((ks-1)*df)//2 = 2
    T_out = T + 2 * padding - (ks - 1) * df               # = 16

    key = jax.random.PRNGKey(0)
    k_x, k_p = jax.random.split(key)
    x = jax.random.normal(k_x, (B, in_ch, T), dtype=jnp.float32)
    v, g, bias = make_params(k_p, in_ch, out_ch, ks)

    out = dil_conv_glu_1d(x, v, g, bias, df)
    out = jax.block_until_ready(out)

    ref = _reference(x, v, g, bias, df, padding)
    assert out.shape == (B, out_ch, T_out), out.shape
    err = float(jnp.max(jnp.abs(out - ref)))
    # Tolerance covers bf16 inputs + approx-EUP reciprocal in the GLU gate.
    assert jnp.allclose(out, ref, atol=5e-3, rtol=5e-3), f"max abs err={err}"

    print("KERNEL_OK")
</pallas_src>

<mosaic_0001>
module attributes {stable_mosaic.version = 11 : i64} {
  func.func @_dil_conv_glu_kernel(%arg0: i32, %arg1: i32, %arg2: i32, %arg3: memref<1x16x128xbf16, #tpu.memory_space<vmem>>, %arg4: memref<1x16x4xbf16, #tpu.memory_space<vmem>>, %arg5: memref<1x8x48xbf16, #tpu.memory_space<vmem>>, %arg6: memref<1x8x1xf32, #tpu.memory_space<vmem>>, %arg7: memref<1x4x128xf32, #tpu.memory_space<vmem>>, %arg8: memref<16x4xbf16, #tpu.memory_space<vmem>>, %arg9: memref<48x128xbf16, #tpu.memory_space<vmem>>) attributes {dimension_semantics = [#tpu.dimension_semantics<parallel>, #tpu.dimension_semantics<parallel>, #tpu.dimension_semantics<arbitrary>], iteration_bounds = array<i64: 2, 1, 1>, scalar_prefetch = 0 : i64, scratch_operands = 2 : i64, tpu.core_type = #tpu.core_type<tc>, window_params = [{transform_indices = @transform_0, window_bounds = array<i64: 1, 16, 128>}, {transform_indices = @transform_1, window_bounds = array<i64: 1, 16, 4>}, {pipeline_mode = #tpu.pipeline_mode<synchronous>, transform_indices = @transform_2, window_bounds = array<i64: 1, 8, 48>}, {pipeline_mode = #tpu.pipeline_mode<synchronous>, transform_indices = @transform_3, window_bounds = array<i64: 1, 8, 1>}, {transform_indices = @transform_4, window_bounds = array<i64: 1, 4, 128>}]} {
    %c0 = arith.constant 0 : index
    %c0_0 = arith.constant 0 : index
    %c0_1 = arith.constant 0 : index
    %0 = vector.load %arg3[%c0, %c0_0, %c0_1] : memref<1x16x128xbf16, #tpu.memory_space<vmem>>, vector<1x16x128xbf16>
    %1 = vector.shape_cast %0 : vector<1x16x128xbf16> to vector<16x128xbf16>
    %c0_i32 = arith.constant 0 : i32
    %2 = arith.cmpi eq, %arg2, %c0_i32 : i32
    %3 = arith.extui %2 : i1 to i32
    %c0_i32_2 = arith.constant 0 : i32
    %4 = arith.cmpi ne, %3, %c0_i32_2 : i32
    scf.if %4 {
      %c0_28 = arith.constant 0 : index
      %c0_29 = arith.constant 0 : index
      %c0_30 = arith.constant 0 : index
      %36 = vector.load %arg4[%c0_28, %c0_29, %c0_30] : memref<1x16x4xbf16, #tpu.memory_space<vmem>>, vector<1x16x4xbf16>
      %37 = vector.shape_cast %36 : vector<1x16x4xbf16> to vector<16x4xbf16>
      %c0_31 = arith.constant 0 : index
      %c0_32 = arith.constant 0 : index
      %38 = vector.load %arg8[%c0_31, %c0_32] : memref<16x4xbf16, #tpu.memory_space<vmem>>, vector<16x4xbf16>
      tpu.vector_store %arg8[%c0_31, %c0_32], %37 {strides = array<i32>} : memref<16x4xbf16, #tpu.memory_space<vmem>>, vector<16x4xbf16>,
    } else {
    }
    %c0_3 = arith.constant 0 : index
    %c0_4 = arith.constant 0 : index
    %5 = vector.load %arg9[%c0_3, %c0_4] : memref<48x128xbf16, #tpu.memory_space<vmem>>, vector<16x128xbf16>
    tpu.vector_store %arg9[%c0_3, %c0_4], %1 {strides = array<i32>} : memref<48x128xbf16, #tpu.memory_space<vmem>>, vector<16x128xbf16>,
    %6 = vector.extract_strided_slice %1 {offsets = [0, 2], sizes = [16, 126], strides = [1, 1]} : vector<16x128xbf16> to vector<16x126xbf16>
    %c16 = arith.constant 16 : index
    %c0_5 = arith.constant 0 : index
    %7 = vector.load %arg9[%c16, %c0_5] : memref<48x128xbf16, #tpu.memory_space<vmem>>, vector<16x126xbf16>
    tpu.vector_store %arg9[%c16, %c0_5], %6 {strides = array<i32>} : memref<48x128xbf16, #tpu.memory_space<vmem>>, vector<16x126xbf16>,
    %c0_6 = arith.constant 0 : index
    %c0_7 = arith.constant 0 : index
    %8 = vector.load %arg8[%c0_6, %c0_7] : memref<16x4xbf16, #tpu.memory_space<vmem>>, vector<16x2xbf16>
    %c16_8 = arith.constant 16 : index
    %c126 = arith.constant 126 : index
    %9 = vector.load %arg9[%c16_8, %c126] : memref<48x128xbf16, #tpu.memory_space<vmem>>, vector<16x2xbf16>
    tpu.vector_store %arg9[%c16_8, %c126], %8 {strides = array<i32>} : memref<48x128xbf16, #tpu.memory_space<vmem>>, vector<16x2xbf16>,
    %10 = vector.extract_strided_slice %1 {offsets = [0, 4], sizes = [16, 124], strides = [1, 1]} : vector<16x128xbf16> to vector<16x124xbf16>
    %c32 = arith.constant 32 : index
    %c0_9 = arith.constant 0 : index
    %11 = vector.load %arg9[%c32, %c0_9] : memref<48x128xbf16, #tpu.memory_space<vmem>>, vector<16x124xbf16>
    tpu.vector_store %arg9[%c32, %c0_9], %10 {strides = array<i32>} : memref<48x128xbf16, #tpu.memory_space<vmem>>, vector<16x124xbf16>,
    %c0_10 = arith.constant 0 : index
    %c0_11 = arith.constant 0 : index
    %12 = vector.load %arg8[%c0_10, %c0_11] : memref<16x4xbf16, #tpu.memory_space<vmem>>, vector<16x4xbf16>
    %c32_12 = arith.constant 32 : index
    %c124 = arith.constant 124 : index
    %13 = vector.load %arg9[%c32_12, %c124] : memref<48x128xbf16, #tpu.memory_space<vmem>>, vector<16x4xbf16>
    tpu.vector_store %arg9[%c32_12, %c124], %12 {strides = array<i32>} : memref<48x128xbf16, #tpu.memory_space<vmem>>, vector<16x4xbf16>,
    %14 = vector.extract_strided_slice %1 {offsets = [0, 0], sizes = [16, 4], strides = [1, 1]} : vector<16x128xbf16> to vector<16x4xbf16>
    %c0_13 = arith.constant 0 : index
    %c0_14 = arith.constant 0 : index
    %15 = vector.load %arg8[%c0_13, %c0_14] : memref<16x4xbf16, #tpu.memory_space<vmem>>, vector<16x4xbf16>
    tpu.vector_store %arg8[%c0_13, %c0_14], %14 {strides = array<i32>} : memref<16x4xbf16, #tpu.memory_space<vmem>>, vector<16x4xbf16>,
    %c0_15 = arith.constant 0 : index
    %c0_16 = arith.constant 0 : index
    %c0_17 = arith.constant 0 : index
    %16 = vector.load %arg5[%c0_15, %c0_16, %c0_17] : memref<1x8x48xbf16, #tpu.memory_space<vmem>>, vector<1x8x48xbf16>
    %17 = vector.shape_cast %16 : vector<1x8x48xbf16> to vector<8x48xbf16>
    %c0_18 = arith.constant 0 : index
    %c0_19 = arith.constant 0 : index
    %18 = vector.load %arg9[%c0_18, %c0_19] : memref<48x128xbf16, #tpu.memory_space<vmem>>, vector<48x128xbf16>
    %cst = arith.constant dense<0.000000e+00> : vector<8x128xf32>
    %19 = tpu.matmul %17, %18, %cst {dimension_numbers = #tpu.dot_dimension_numbers<[1], [0], [0], [1], [0, 0, 1, 1], [], []>} : vector<8x48xbf16>, vector<48x128xbf16>, vector<8x128xf32> -> vector<8x128xf32>
    %c0_20 = arith.constant 0 : index
    %c0_21 = arith.constant 0 : index
    %c0_22 = arith.constant 0 : index
    %20 = vector.load %arg6[%c0_20, %c0_21, %c0_22] : memref<1x8x1xf32, #tpu.memory_space<vmem>>, vector<1x8x1xf32>
    %21 = vector.shape_cast %20 : vector<1x8x1xf32> to vector<8x1xf32>
    %22 = vector.broadcast %21 : vector<8x1xf32> to vector<8x128xf32>
    %23 = arith.addf %19, %22 : vector<8x128xf32>
    %24 = vector.extract_strided_slice %23 {offsets = [0, 0], sizes = [4, 128], strides = [1, 1]} : vector<8x128xf32> to vector<4x128xf32>
    %25 = vector.extract_strided_slice %23 {offsets = [4, 0], sizes = [4, 128], strides = [1, 1]} : vector<8x128xf32> to vector<4x128xf32>
    %cst_23 = arith.constant 0.000000e+00 : f32
    %26 = vector.broadcast %cst_23 : f32 to vector<4x128xf32>
    %27 = arith.subf %26, %25 : vector<4x128xf32>
    %28 = math.exp %27 : vector<4x128xf32>
    %cst_24 = arith.constant 1.000000e+00 : f32
    %29 = vector.broadcast %cst_24 : f32 to vector<4x128xf32>
    %30 = arith.addf %29, %28 : vector<4x128xf32>
    %31 = tpu.reciprocal %30 {approx = true} : vector<4x128xf32> -> vector<4x128xf32>
    %32 = arith.mulf %24, %31 : vector<4x128xf32>
    %c0_25 = arith.constant 0 : index
    %c0_26 = arith.constant 0 : index
    %c0_27 = arith.constant 0 : index
    %33 = vector.load %arg7[%c0_25, %c0_26, %c0_27] : memref<1x4x128xf32, #tpu.memory_space<vmem>>, vector<1x4x128xf32>
    %34 = vector.shape_cast %33 : vector<1x4x128xf32> to vector<4x128xf32>
    %35 = vector.shape_cast %32 : vector<4x128xf32> to vector<1x4x128xf32>
    tpu.vector_store %arg7[%c0_25, %c0_26, %c0_27], %35 {strides = array<i32>} : memref<1x4x128xf32, #tpu.memory_space<vmem>>, vector<1x4x128xf32>,
    return
  }
  func.func @transform_0(%arg0: i32, %arg1: i32, %arg2: i32) -> (i32, i32, i32) {
    %c0_i32 = arith.constant 0 : i32
    %0 = arith.subi %c0_i32, %arg2 : i32
    %c0_i32_0 = arith.constant 0 : i32
    %c0_i32_1 = arith.constant 0 : i32
    return %arg0, %c0_i32_0, %0 : i32, i32, i32
  }
  func.func @transform_1(%arg0: i32, %arg1: i32, %arg2: i32) -> (i32, i32, i32) {
    %c0_i32 = arith.constant 0 : i32
    %c0_i32_0 = arith.constant 0 : i32
    %c0_i32_1 = arith.constant 0 : i32
    return %arg0, %c0_i32, %c0_i32_0 : i32, i32, i32
  }
  func.func @transform_2(%arg0: i32, %arg1: i32, %arg2: i32) -> (i32, i32, i32) {
    %c0_i32 = arith.constant 0 : i32
    %c0_i32_0 = arith.constant 0 : i32
    %c0_i32_1 = arith.constant 0 : i32
    return %arg1, %c0_i32, %c0_i32_0 : i32, i32, i32
  }
  func.func @transform_3(%arg0: i32, %arg1: i32, %arg2: i32) -> (i32, i32, i32) {
    %c0_i32 = arith.constant 0 : i32
    %c0_i32_0 = arith.constant 0 : i32
    %c0_i32_1 = arith.constant 0 : i32
    return %arg1, %c0_i32, %c0_i32_0 : i32, i32, i32
  }
  func.func @transform_4(%arg0: i32, %arg1: i32, %arg2: i32) -> (i32, i32, i32) {
    %c0_i32 = arith.constant 0 : i32
    %0 = arith.subi %c0_i32, %arg2 : i32
    %c0_i32_0 = arith.constant 0 : i32
    return %arg0, %arg1, %0 : i32, i32, i32
  }
}

module attributes {stable_mosaic.version = 11 : i64} {
  func.func @_dil_conv_glu_kernel(%arg0: i32, %arg1: i32, %arg2: i32, %arg3: memref<1x16x128xbf16, #tpu.memory_space<vmem>>, %arg4: memref<1x16x4xbf16, #tpu.memory_space<vmem>>, %arg5: memref<1x8x48xbf16, #tpu.memory_space<vmem>>, %arg6: memref<1x8x1xf32, #tpu.memory_space<vmem>>, %arg7: memref<1x4x128xf32, #tpu.memory_space<vmem>>, %arg8: memref<16x4xbf16, #tpu.memory_space<vmem>>, %arg9: memref<48x128xbf16, #tpu.memory_space<vmem>>) attributes {dimension_semantics = [#tpu.dimension_semantics<parallel>, #tpu.dimension_semantics<parallel>, #tpu.dimension_semantics<arbitrary>], iteration_bounds = array<i64: 2, 1, 1>, scalar_prefetch = 0 : i64, scratch_operands = 2 : i64, tpu.core_type = #tpu.core_type<tc>, window_params = [{transform_indices = @transform_0, window_bounds = array<i64: 1, 16, 128>}, {transform_indices = @transform_1, window_bounds = array<i64: 1, 16, 4>}, {transform_indices = @transform_2, window_bounds = array<i64: 1, 8, 48>}, {transform_indices = @transform_3, window_bounds = array<i64: 1, 8, 1>}, {transform_indices = @transform_4, window_bounds = array<i64: 1, 4, 128>}]} {
    %c0 = arith.constant 0 : index
    %c0_0 = arith.constant 0 : index
    %c0_1 = arith.constant 0 : index
    %0 = vector.load %arg3[%c0, %c0_0, %c0_1] : memref<1x16x128xbf16, #tpu.memory_space<vmem>>, vector<1x16x128xbf16>
    %1 = vector.shape_cast %0 : vector<1x16x128xbf16> to vector<16x128xbf16>
    %c0_i32 = arith.constant 0 : i32
    %2 = arith.cmpi eq, %arg2, %c0_i32 : i32
    %3 = arith.extui %2 : i1 to i32
    %c0_i32_2 = arith.constant 0 : i32
    %4 = arith.cmpi ne, %3, %c0_i32_2 : i32
    scf.if %4 {
      %c0_28 = arith.constant 0 : index
      %c0_29 = arith.constant 0 : index
      %c0_30 = arith.constant 0 : index
      %36 = vector.load %arg4[%c0_28, %c0_29, %c0_30] : memref<1x16x4xbf16, #tpu.memory_space<vmem>>, vector<1x16x4xbf16>
      %37 = vector.shape_cast %36 : vector<1x16x4xbf16> to vector<16x4xbf16>
      %c0_31 = arith.constant 0 : index
      %c0_32 = arith.constant 0 : index
      %38 = vector.load %arg8[%c0_31, %c0_32] : memref<16x4xbf16, #tpu.memory_space<vmem>>, vector<16x4xbf16>
      tpu.vector_store %arg8[%c0_31, %c0_32], %37 {strides = array<i32>} : memref<16x4xbf16, #tpu.memory_space<vmem>>, vector<16x4xbf16>,
    } else {
    }
    %c0_3 = arith.constant 0 : index
    %c0_4 = arith.constant 0 : index
    %5 = vector.load %arg9[%c0_3, %c0_4] : memref<48x128xbf16, #tpu.memory_space<vmem>>, vector<16x128xbf16>
    tpu.vector_store %arg9[%c0_3, %c0_4], %1 {strides = array<i32>} : memref<48x128xbf16, #tpu.memory_space<vmem>>, vector<16x128xbf16>,
    %6 = vector.extract_strided_slice %1 {offsets = [0, 2], sizes = [16, 126], strides = [1, 1]} : vector<16x128xbf16> to vector<16x126xbf16>
    %c16 = arith.constant 16 : index
    %c0_5 = arith.constant 0 : index
    %7 = vector.load %arg9[%c16, %c0_5] : memref<48x128xbf16, #tpu.memory_space<vmem>>, vector<16x126xbf16>
    tpu.vector_store %arg9[%c16, %c0_5], %6 {strides = array<i32>} : memref<48x128xbf16, #tpu.memory_space<vmem>>, vector<16x126xbf16>,
    %c0_6 = arith.constant 0 : index
    %c0_7 = arith.constant 0 : index
    %8 = vector.load %arg8[%c0_6, %c0_7] : memref<16x4xbf16, #tpu.memory_space<vmem>>, vector<16x2xbf16>
    %c16_8 = arith.constant 16 : index
    %c126 = arith.constant 126 : index
    %9 = vector.load %arg9[%c16_8, %c126] : memref<48x128xbf16, #tpu.memory_space<vmem>>, vector<16x2xbf16>
    tpu.vector_store %arg9[%c16_8, %c126], %8 {strides = array<i32>} : memref<48x128xbf16, #tpu.memory_space<vmem>>, vector<16x2xbf16>,
    %10 = vector.extract_strided_slice %1 {offsets = [0, 4], sizes = [16, 124], strides = [1, 1]} : vector<16x128xbf16> to vector<16x124xbf16>
    %c32 = arith.constant 32 : index
    %c0_9 = arith.constant 0 : index
    %11 = vector.load %arg9[%c32, %c0_9] : memref<48x128xbf16, #tpu.memory_space<vmem>>, vector<16x124xbf16>
    tpu.vector_store %arg9[%c32, %c0_9], %10 {strides = array<i32>} : memref<48x128xbf16, #tpu.memory_space<vmem>>, vector<16x124xbf16>,
    %c0_10 = arith.constant 0 : index
    %c0_11 = arith.constant 0 : index
    %12 = vector.load %arg8[%c0_10, %c0_11] : memref<16x4xbf16, #tpu.memory_space<vmem>>, vector<16x4xbf16>
    %c32_12 = arith.constant 32 : index
    %c124 = arith.constant 124 : index
    %13 = vector.load %arg9[%c32_12, %c124] : memref<48x128xbf16, #tpu.memory_space<vmem>>, vector<16x4xbf16>
    tpu.vector_store %arg9[%c32_12, %c124], %12 {strides = array<i32>} : memref<48x128xbf16, #tpu.memory_space<vmem>>, vector<16x4xbf16>,
    %14 = vector.extract_strided_slice %1 {offsets = [0, 0], sizes = [16, 4], strides = [1, 1]} : vector<16x128xbf16> to vector<16x4xbf16>
    %c0_13 = arith.constant 0 : index
    %c0_14 = arith.constant 0 : index
    %15 = vector.load %arg8[%c0_13, %c0_14] : memref<16x4xbf16, #tpu.memory_space<vmem>>, vector<16x4xbf16>
    tpu.vector_store %arg8[%c0_13, %c0_14], %14 {strides = array<i32>} : memref<16x4xbf16, #tpu.memory_space<vmem>>, vector<16x4xbf16>,
    %c0_15 = arith.constant 0 : index
    %c0_16 = arith.constant 0 : index
    %c0_17 = arith.constant 0 : index
    %16 = vector.load %arg5[%c0_15, %c0_16, %c0_17] : memref<1x8x48xbf16, #tpu.memory_space<vmem>>, vector<1x8x48xbf16>
    %17 = vector.shape_cast %16 : vector<1x8x48xbf16> to vector<8x48xbf16>
    %c0_18 = arith.constant 0 : index
    %c0_19 = arith.constant 0 : index
    %18 = vector.load %arg9[%c0_18, %c0_19] : memref<48x128xbf16, #tpu.memory_space<vmem>>, vector<48x128xbf16>
    %cst = arith.constant dense<0.000000e+00> : vector<8x128xf32>
    %19 = tpu.matmul %17, %18, %cst {dimension_numbers = #tpu.dot_dimension_numbers<[1], [0], [0], [1], [0, 0, 1, 1], [], []>} : vector<8x48xbf16>, vector<48x128xbf16>, vector<8x128xf32> -> vector<8x128xf32>
    %c0_20 = arith.constant 0 : index
    %c0_21 = arith.constant 0 : index
    %c0_22 = arith.constant 0 : index
    %20 = vector.load %arg6[%c0_20, %c0_21, %c0_22] : memref<1x8x1xf32, #tpu.memory_space<vmem>>, vector<1x8x1xf32>
    %21 = vector.shape_cast %20 : vector<1x8x1xf32> to vector<8x1xf32>
    %22 = vector.broadcast %21 : vector<8x1xf32> to vector<8x128xf32>
    %23 = arith.addf %19, %22 : vector<8x128xf32>
    %24 = vector.extract_strided_slice %23 {offsets = [0, 0], sizes = [4, 128], strides = [1, 1]} : vector<8x128xf32> to vector<4x128xf32>
    %25 = vector.extract_strided_slice %23 {offsets = [4, 0], sizes = [4, 128], strides = [1, 1]} : vector<8x128xf32> to vector<4x128xf32>
    %cst_23 = arith.constant 0.000000e+00 : f32
    %26 = vector.broadcast %cst_23 : f32 to vector<4x128xf32>
    %27 = arith.subf %26, %25 : vector<4x128xf32>
    %28 = math.exp %27 : vector<4x128xf32>
    %cst_24 = arith.constant 1.000000e+00 : f32
    %29 = vector.broadcast %cst_24 : f32 to vector<4x128xf32>
    %30 = arith.addf %29, %28 : vector<4x128xf32>
    %31 = tpu.reciprocal %30 {approx = true} : vector<4x128xf32> -> vector<4x128xf32>
    %32 = arith.mulf %24, %31 : vector<4x128xf32>
    %c0_25 = arith.constant 0 : index
    %c0_26 = arith.constant 0 : index
    %c0_27 = arith.constant 0 : index
    %33 = vector.load %arg7[%c0_25, %c0_26, %c0_27] : memref<1x4x128xf32, #tpu.memory_space<vmem>>, vector<1x4x128xf32>
    %34 = vector.shape_cast %33 : vector<1x4x128xf32> to vector<4x128xf32>
    %35 = vector.shape_cast %32 : vector<4x128xf32> to vector<1x4x128xf32>
    tpu.vector_store %arg7[%c0_25, %c0_26, %c0_27], %35 {strides = array<i32>} : memref<1x4x128xf32, #tpu.memory_space<vmem>>, vector<1x4x128xf32>,
    return
  }
  func.func @transform_0(%arg0: i32, %arg1: i32, %arg2: i32) -> (i32, i32, i32) {
    %c0_i32 = arith.constant 0 : i32
    %0 = arith.subi %c0_i32, %arg2 : i32
    %c0_i32_0 = arith.constant 0 : i32
    %c0_i32_1 = arith.constant 0 : i32
    return %arg0, %c0_i32_0, %0 : i32, i32, i32
  }
  func.func @transform_1(%arg0: i32, %arg1: i32, %arg2: i32) -> (i32, i32, i32) {
    %c0_i32 = arith.constant 0 : i32
    %c0_i32_0 = arith.constant 0 : i32
    %c0_i32_1 = arith.constant 0 : i32
    return %arg0, %c0_i32, %c0_i32_0 : i32, i32, i32
  }
  func.func @transform_2(%arg0: i32, %arg1: i32, %arg2: i32) -> (i32, i32, i32) {
    %c0_i32 = arith.constant 0 : i32
    %c0_i32_0 = arith.constant 0 : i32
    %c0_i32_1 = arith.constant 0 : i32
    return %arg1, %c0_i32, %c0_i32_0 : i32, i32, i32
  }
  func.func @transform_3(%arg0: i32, %arg1: i32, %arg2: i32) -> (i32, i32, i32) {
    %c0_i32 = arith.constant 0 : i32
    %c0_i32_0 = arith.constant 0 : i32
    %c0_i32_1 = arith.constant 0 : i32
    return %arg1, %c0_i32, %c0_i32_0 : i32, i32, i32
  }
  func.func @transform_4(%arg0: i32, %arg1: i32, %arg2: i32) -> (i32, i32, i32) {
    %c0_i32 = arith.constant 0 : i32
    %0 = arith.subi %c0_i32, %arg2 : i32
    %c0_i32_0 = arith.constant 0 : i32
    return %arg0, %arg1, %0 : i32, i32, i32
  }
}

</mosaic_0001>

<bundles_post_ra>
// kernel: tpu_custom_call.1
= control target key start
LH: loop header
LB: loop body
LE: loop exit
PB: predicated region body
PF: predicated region fallthrough
CT: control target
= control target key end

     0   :  { %9 = vsyncpa [#allocation5], 0  ;;  %s1007_s0 = inlined_call_operand.hbm [shape: bf16[2,16,132], index: 0, kind: input, shape index: {}]   ;;  %s1008_s1 = inlined_call_operand.vmem [shape: bf16[2,16,4], index: 1, kind: input, shape index: {}]   ;;  %s1009_s2 = inlined_call_operand.vmem [shape: bf16[1,8,48], index: 2, kind: input, shape index: {}]   ;;  %s1010_s3 = inlined_call_operand.vmem [shape: f32[1,8,1], index: 3, kind: input, shape index: {}]   ;;  %s1011_s4 = inlined_call_operand.hbm [shape: f32[2,4,128], index: 4, kind: output, shape index: {}]  }
   0x1   :  { %11 = vsyncpa [#allocation5 + $0x1], 0 }
   0x2   :  { %12 = vsyncpa [#allocation6], 0 }
   0x3   :  { %14 = vsyncpa [#allocation6 + $0x1], 0  ;;  %s824_s15 = smov 0   ;;  %s826_s16 = smov 0  }
   0x4   :  { %s828_s17 = smov 0   ;;  %s830_s18 = smov 0  }
   0x5   :  { %s832_s19 = smov 0   ;;  %s834_s20 = smov 0  }
   0x6 LB: > { %s561_s21 = sadd.s32 4294967295, %s787_s20   ;;  %s562_s22 = sadd.s32 4294967294, %s787_s20   ;;  %s787_s20 = sphi %s834_s20, %s20_s20   ;;  %s783_s19 = sphi %s832_s19, %s1025_s19   ;;  %s779_s18 = sphi %s830_s18, %s1024_s18   ;;  %s775_s17 = sphi %s828_s17, %s1023_s17   ;;  %s771_s16 = sphi %s826_s16, %s1022_s16   ;;  %s767_s15 = sphi %s824_s15, %s1021_s15  }
   0x7   : > { %s39_s23 = sadd.s32 1, %s783_s19  ;;  %s50_s24 = sadd.s32 1, %s775_s17 }
   0x8   : > { %p41_p0 = scmp.ge.s32.totalorder %s39_s23, 2  ;;  %p57_p1 = scmp.ne.s32.totalorder %s775_s17, %s771_s16 }
   0x9   : > { %p58_p2 = scmp.eq.s32.totalorder %s787_s20, 0  ;;  %p63_p3 = scmp.ne.s32.totalorder %s771_s16, %s767_s15 }
   0xa   : > { %s1027_s23 = smov (%p41_p0, %s39_s23), 0  ;;  %p64_p5 = scmp.eq.s32.totalorder %s561_s21, 0 }
   0xb   : > { %p865_p4 = por %p58_p2, %p57_p1  ;;  %s45_s26 = ssub.s32 %s783_s19, %s1027_s23 }
   0xc   : > { %p171_p6 = scmp.eq.s32.totalorder %s561_s21, 1  ;;  %p48_p7 = scmp.eq.s32.totalorder %s45_s26, 0 }
   0xd   : > { %p871_p8 = por %p64_p5, %p63_p3  ;;  %p177_p10 = scmp.eq.s32.totalorder %s562_s22, 1 }
   0xe   : > { %p875_p9 = por %p171_p6, %p57_p1  ;;  %p610_p13 = scmp.lt.s32.totalorder %s787_s20, 2 }
   0xf   : > { %s880_s29 = scalar_select %p48_p7, %s775_s17, %s50_s24  }
  0x10   : > { %s1015_s28 = scalar_select %p875_p9, 1, 0 }
  0x11   : > { %p882_p11 = por %p177_p10, %p63_p3  ;;  %s211_s5 = sand.u32 1, %s775_s17  }
  0x12   : > { %s567_s6 = sshll.u32 %s211_s5, 3  ;;  %s582_s7 = sshll.u32 %s783_s19, 8 }
  0x13   : > { %s1016_s30 = scalar_select %p882_p11, 1, 0 }
  0x14   : > { %s893_s10 = scalar_lea.hbm %s1007_s0, %s582_s7  ;;  %s215_s11 = scalar_lea.vmem [#allocation4], %s567_s6 }
  0x15   : > { %s224_s12 = sshll.u32 %s215_s11, 4  ;;  %p899_p0 = pnand %p610_p13, %p865_p4  ;;  %s895_s12 = int_to_ptr.vmem [resolvable:$true] %s224_s12 }
  0x16   : > { %s903_s14 = scalar_lea.sflag [#allocation5], %s211_s5  ;;  %s675_s21 = scalar_lea.hbm %s893_s10, 128 }
  0x17   : > { %p676_p1 = scmp.ne.s32.totalorder %s893_s10, %s675_s21  ;;  %p677_p2 = pneg %p899_p0 }
  0x18   : > { %s680_s25 = scalar_lea.hbm %s1007_s0, 512  ;;  %p681_p4 = scmp.lt.u32.totalorder %s893_s10, %s1007_s0 }
  0x19   : > { %p678_p3 = pnand %p677_p2, %p676_p1  ;;  %p682_p6 = scmp.lt.u32.totalorder %s680_s25, %s675_s21 }
  0x1a   : > { %p684_p10 = scmp.lt.u32.totalorder %s675_s21, %s893_s10 }
  0x1b   : > { %p679_p5 = pneg %p678_p3  ;;  %p683_p7 = por %p682_p6, %p681_p4 }
  0x1d   : > { %p685_p13 = por %p684_p10, %p683_p7 }
  0x1f   : > { %p686_p12 = pnand %p685_p13, %p679_p5 }
  0x21   : > { %689 = shalt.err (!%p686_p12)
}
  0x22   : > { %s690_s5 = scalar_lea.vmem %s895_s12, 128  ;;  %s789_s7 = smov [#allocation4]  }
  0x23   : > { %p691_p1 = scmp.ne.s32.totalorder %s895_s12, %s690_s5  ;;  %s695_s8 = sshll.u32 %s789_s7, 4  ;;  %s696_s8 = int_to_ptr.vmem [resolvable:$false] %s695_s8 }
  0x24   : > { %s697_s9 = scalar_lea.vmem %s696_s8, 256  ;;  %p698_p9 = scmp.lt.s32.totalorder %s895_s12, %s696_s8 }
  0x25   : > { %p693_p3 = pnand %p691_p1, %p677_p2  ;;  %p699_p4 = scmp.lt.s32.totalorder %s697_s9, %s690_s5 }
  0x27   : > { %p694_p11 = pneg %p693_p3  ;;  %p700_p6 = por %p699_p4, %p698_p9 }
  0x29   : > { %p701_p7 = pnand %p700_p6, %p694_p11 }
  0x2b   : > { %704 = shalt.err (!%p701_p7)
}
  0x2c   : > { %s790_s11 = smov 128   ;;  %s791_s21 = smov 64  }
  0x2d   : > { %s792_s22 = smov 4   ;;  %p570_p12 = scmp.ge.s32.totalorder %s787_s20, 1 }
  0x2e   : > { %605 = dma.hbm_to_vmem [thread:$0]  (!%p899_p0), %s893_s10, 128, %s895_s12, %s903_s14, %s790_s11, %s791_s21, %s792_s22  }
  0x2f   : > { %p240_p2 = scmp.lt.s32.totalorder %s787_s20, 3 }
  0x31   : > { %p241_p5 = pnand %p570_p12, %p240_p2 }
  0x32   : > { %s934_s24 = sand.u32 (!%p241_p5), 1, %s771_s16  }
  0x33   : > { %244 = sbr.rel (%p241_p5) target bundleno = 464 (0x1d0), region = 36  ;;  %s571_s25 = sshll.u32 (!%p241_p5), %s934_s24, 3 }
  0x34   : > { %s247_s26 = scalar_lea.sflag (!%p241_p5), [#allocation5], %s934_s24  ;;  %s250_s6 = scalar_lea.vmem (!%p241_p5), [#allocation4], %s571_s25 }
  0x3a   : > { %758 = dma.done.wait (%p871_p8), %s247_s26, 128  }
  0x3b   : > { %760 = vsyncadd (%p871_p8), %s247_s26, 4294967168  ;;  %p289_p9 = scmp.lt.s32.totalorder %s779_s18, 1  ;;  %v793_v0 = vmov 0.0   ;;  %v669_v1 = vld [vmem:[%s250_s6] sm:$0xff]   ;;  %vm318_vm0 = vcmask 31744   ;;  %s794_s7 = smov 126  }
  0x3c   : > { %588 = vmatprep.subr.bf16.mxu0 %v793_v0  ;;  %327 = vrot.lane.b32.xlu0 %v669_v1, %s794_s7  ;;  %s795_s8 = smov 124   ;;  %vm796_vm1 = vmmov 0   ;;  %v357_v4 = vld [vmem:[%s1010_s3] sm:$0xff]  ;;  %v797_v5 = vmov 0   ;;  %vm330_vm2 = vcmask 1031168   ;;  %vm342_vm3 = vcmask 1014784  }
  0x3d   : > { %s290_s10 = scalar_select %p289_p9, %s779_s18, 1  ;;  %339 = vrot.lane.b32.xlu1 %v669_v1, %s795_s8  ;;  %589 = vmatpush3.bf16.msra.mxu0 %v669_v1  ;;  %vm337_vm4 = vcmask 1048560   ;;  %vm349_vm5 = vcmask 1048544   ;;  %v353_v12 = vld [vmem:[%s1009_s2] sm:$0xf]  ;;  %vm363_vm6 = vcmask 392192  }
  0x3e   : > { %590 = vmatprep.subr.bf16.mxu0 %v793_v0  ;;  %594 = vmatprep.mubr.msk.bf16.mxu0 %vm796_vm1, %v793_v0  ;;  %s572_s22 = sshll.u32 %s934_s24, 2  ;;  %s579_s25 = sshll.u32 %s779_s18, 6 }
  0x3f   : > { %s583_s12 = sshll.u32 %s290_s10, 3  ;;  %668 = vset.pattern.permute.xlu0 %v797_v5  ;;  %s287_s26 = scalar_lea.vmem [#allocation7], %s572_s22 }
  0x40   : > { %s293_s5 = scalar_lea.vmem %s1008_s1, %s583_s12  ;;  %s434_s6 = sshll.u32 %s287_s26, 4  ;;  %s960_s6 = int_to_ptr.vmem [resolvable:$true] %s434_s6 }
  0x41   : > { %v670_v2 = vld [vmem:[%s293_s5] sm:$0xff]   ;;  %s958_s13 = scalar_lea.hbm %s1011_s4, %s579_s25  ;;  %s418_s14 = scalar_lea.sflag [#allocation6], %s934_s24 }
  0x42   : > { %319 = vst.msk [vmem:[#allocation2] sm:$0xff] %vm318_vm0, %v670_v2  ;;  %s705_s5 = scalar_lea.vmem %s960_s6, 64  ;;  %p1018_p11 = scmp.ne.s32.totalorder %s1015_s28, 0 }
  0x43   : > { %p706_p8 = scmp.ne.s32.totalorder %s960_s6, %s705_s5  ;;  %s798_s18 = smov [#allocation7]  }
  0x45   : > { %p707_p0 = pnand %p706_p8, %p1018_p11 }
  0x47   : > { %p708_p10 = pneg %p707_p0 }
  0x49   : > { %v332_v3 = vld [vmem:[#allocation2] sm:$0xff] }
  0x4a   : > { %334 = vrot.lane.b32.xlu0 %v332_v3, %s794_s7  ;;  %346 = vrot.lane.b32.xlu1 %v332_v3, %s795_s8  ;;  %352 = vst.msk [vmem:[#allocation2] sm:$0xff] %vm318_vm0, %v669_v1  ;;  %s709_s7 = sshll.u32 %s798_s18, 4  ;;  %s710_s7 = int_to_ptr.vmem [resolvable:$false] %s709_s7 }
  0x4b   : > { %s711_s8 = scalar_lea.vmem %s710_s7, 128  ;;  %p712_p13 = scmp.lt.s32.totalorder %s960_s6, %s710_s7 }
  0x4c   : > { %p713_p1 = scmp.lt.s32.totalorder %s711_s8, %s705_s5 }
  0x4e   : > { %360 = vperm.xlu0 %668, %v357_v4   ;;  %p714_p3 = por %p713_p1, %p712_p13 }
  0x50   : > { %p715_p4 = pnand %p714_p3, %p708_p10 }
  0xae   : > { %v328_v6 = vpop.permute.xlu0 %327 }
  0xaf   : > { %v340_v7 = vpop.permute.xlu1 %339  ;;  %331 = vst.msk [vmem:[#allocation3 + $0x8] sm:$0xff] %vm330_vm2, %v328_v6 }
  0xb0   : > { %343 = vst.msk [vmem:[#allocation3 + $0x10] sm:$0xff] %vm342_vm3, %v340_v7 }
  0xbc   : > { %v335_v8 = vpop.permute.xlu0 %334  ;;  %v347_v9 = vpop.permute.xlu1 %346 }
  0xbd   : > { %338 = vst.msk [vmem:[#allocation3 + $0x8] sm:$0xff] %vm337_vm4, %v335_v8 }
  0xbe   : > { %350 = vst.msk [vmem:[#allocation3 + $0x10] sm:$0xff] %vm349_vm5, %v347_v9 }
  0xc4   : > { %v355_v10 = vld [vmem:[#allocation3 + $0x8] sm:$0xff] }
  0xc5   : > { %591 = vmatpush3.bf16.msra.mxu0 %v355_v10  ;;  %v356_v11 = vld [vmem:[#allocation3 + $0x10] sm:$0xff] }
  0xc6   : > { %592 = vmatprep.subr.bf16.mxu0 %v793_v0 }
  0xc9   : > { %593 = vmatpush3.bf16.msra.mxu0 %v356_v11 }
  0xcc   : > { %595 = vmatmul.mubr.msk.bf16.vlgmr.msra.gmra.mrb[0].mxu0 %vm363_vm6, %v353_v12 }
  0xcd   : > { %v361_v13 = vpop.permute.xlu0 %360 }
 0x19f   : > { %v401_v14 = vpop.f32.mrb[0].mxu0 }
 0x1a0   : > { %v402_v15 = vadd.f32 %v401_v14, %v361_v13  ;;  %v596_v16 = vpop.f32.mrb[1].mxu0 }
 0x1a1   : > { %v404_v17 = vpop.f32.mrb[2].mxu0 }
 0x1a2   : > { %v407_v18 = vsub.f32 0.0, %v402_v15  ;;  %v597_v19 = vpop.f32.mrb[3].mxu0 }
 0x1a4   : > { %v408_v20 = vmul.f32 1.442695, %v407_v18 }
 0x1a6   : > { %671 = vpow2.f32 %v408_v20 }
 0x1b0   : > { %v672_v21 = vpop.eup %671 }
 0x1b1   : > { %v410_v22 = vadd.f32 1.0, %v672_v21 }
 0x1b3   : > { %673 = vrcp.f32 %v410_v22 }
 0x1bd   : > { %v674_v23 = vpop.eup %673 }
 0x1be   : > { %v413_v24 = vrot.slane %v674_v23, 4 }
 0x1c0   : > { %v415_v25 = vmul.f32 %v413_v24, %v402_v15 }
 0x1c2   : > { %416 = vst [vmem:[%s287_s26] sm:$0xf] %v415_v25 }
 0x1c3   : > { %718 = shalt.err (!%p715_p4)
}
 0x1c4   : > { %s719_s24 = scalar_lea.hbm %s958_s13, 64  ;;  %s723_s11 = scalar_lea.hbm %s1011_s4, 128 }
 0x1c5   : > { %p720_p6 = scmp.ne.s32.totalorder %s958_s13, %s719_s24  ;;  %p724_p2 = scmp.lt.u32.totalorder %s958_s13, %s1011_s4 }
 0x1c6   : > { %p725_p5 = scmp.lt.u32.totalorder %s723_s11, %s719_s24  ;;  %p727_p8 = scmp.lt.u32.totalorder %s719_s24, %s958_s13 }
 0x1c7   : > { %p721_p7 = pnand %p720_p6, %p1018_p11 }
 0x1c8   : > { %p726_p9 = por %p725_p5, %p724_p2 }
 0x1c9   : > { %p722_p12 = pneg %p721_p7 }
 0x1ca   : > { %p728_p0 = por %p727_p8, %p726_p9 }
 0x1cc   : > { %p729_p10 = pnand %p728_p0, %p722_p12 }
 0x1ce   : > { %732 = shalt.err (!%p729_p10)
}
 0x1cf   : > { %600 = dma.vmem_to_hbm [thread:$0]  (%p1018_p11), %s960_s6, 64, %s958_s13, %s418_s14  }
 0x1d0 PF: > { %s446_s25 = sand.u32 1, %s767_s15   ;;  %p1019_p13 = scmp.ne.s32.totalorder %s1016_s30, 0 }
 0x1d1   : > { %p1020_p1 = scmp.ge.s32.totalorder %s787_s20, 2  ;;  %s447_s26 = scalar_lea.sflag [#allocation6], %s446_s25 }
 0x1d3   : > { %p607_p3 = pnand %p1020_p1, %p1019_p13 }
 0x1d5   : > { %762 = dma.done.wait (!%p607_p3), %s447_s26, 64  }
 0x1d6   : > { %764 = vsyncadd (!%p607_p3), %s447_s26, 4294967232  ;;  %s20_s20 = sadd.s32 1, %s787_s20   ;;  %s1021_s15 = smov %s771_s16 }
 0x1d7   : > { %p17_p4 = scmp.ge.s32.totalorder %s20_s20, 4   ;;  %s1022_s16 = smov %s775_s17 }
 0x1d8   : > { %s1023_s17 = smov %s880_s29  ;;  %s1024_s18 = smov %s783_s19 }
 0x1d9   : > { %s1025_s19 = smov %s1027_s23  ;;  %19 = sbr.rel (!%p17_p4) target bundleno = 6 (0x6), region = 94 }
 0x1e0   :  { %452 = vsyncpa [#allocation5], 1 }
 0x1e1   :  { %454 = vsyncpa [#allocation5 + $0x1], 1 }
 0x1e2   :  { %455 = vsyncpa [#allocation6], 1 }
 0x1e3   :  { %457 = vsyncpa [#allocation6 + $0x1], 1 }

// kernel: tpu_custom_call.1
= control target key start
LH: loop header
LB: loop body
LE: loop exit
PB: predicated region body
PF: predicated region fallthrough
CT: control target
= control target key end

     0   :  { %9 = vsyncpa [#allocation5], 0  ;;  %s1007_s0 = inlined_call_operand.hbm [shape: bf16[2,16,132], index: 0, kind: input, shape index: {}]   ;;  %s1008_s1 = inlined_call_operand.vmem [shape: bf16[2,16,4], index: 1, kind: input, shape index: {}]   ;;  %s1009_s2 = inlined_call_operand.vmem [shape: bf16[1,8,48], index: 2, kind: input, shape index: {}]   ;;  %s1010_s3 = inlined_call_operand.vmem [shape: f32[1,8,1], index: 3, kind: input, shape index: {}]   ;;  %s1011_s4 = inlined_call_operand.hbm [shape: f32[2,4,128], index: 4, kind: output, shape index: {}]  }
   0x1   :  { %11 = vsyncpa [#allocation5 + $0x1], 0 }
   0x2   :  { %12 = vsyncpa [#allocation6], 0 }
   0x3   :  { %14 = vsyncpa [#allocation6 + $0x1], 0  ;;  %s824_s15 = smov 0   ;;  %s826_s16 = smov 0  }
   0x4   :  { %s828_s17 = smov 0   ;;  %s830_s18 = smov 0  }
   0x5   :  { %s832_s19 = smov 0   ;;  %s834_s20 = smov 0  }
   0x6 LB: > { %s561_s21 = sadd.s32 4294967295, %s787_s20   ;;  %s562_s22 = sadd.s32 4294967294, %s787_s20   ;;  %s787_s20 = sphi %s834_s20, %s20_s20   ;;  %s783_s19 = sphi %s832_s19, %s1025_s19   ;;  %s779_s18 = sphi %s830_s18, %s1024_s18   ;;  %s775_s17 = sphi %s828_s17, %s1023_s17   ;;  %s771_s16 = sphi %s826_s16, %s1022_s16   ;;  %s767_s15 = sphi %s824_s15, %s1021_s15  }
   0x7   : > { %s39_s23 = sadd.s32 1, %s783_s19  ;;  %s50_s24 = sadd.s32 1, %s775_s17 }
   0x8   : > { %p41_p0 = scmp.ge.s32.totalorder %s39_s23, 2  ;;  %p57_p1 = scmp.ne.s32.totalorder %s775_s17, %s771_s16 }
   0x9   : > { %p58_p2 = scmp.eq.s32.totalorder %s787_s20, 0  ;;  %p63_p3 = scmp.ne.s32.totalorder %s771_s16, %s767_s15 }
   0xa   : > { %s1027_s23 = smov (%p41_p0, %s39_s23), 0  ;;  %p64_p5 = scmp.eq.s32.totalorder %s561_s21, 0 }
   0xb   : > { %p865_p4 = por %p58_p2, %p57_p1  ;;  %s45_s26 = ssub.s32 %s783_s19, %s1027_s23 }
   0xc   : > { %p171_p6 = scmp.eq.s32.totalorder %s561_s21, 1  ;;  %p48_p7 = scmp.eq.s32.totalorder %s45_s26, 0 }
   0xd   : > { %p871_p8 = por %p64_p5, %p63_p3  ;;  %p177_p10 = scmp.eq.s32.totalorder %s562_s22, 1 }
   0xe   : > { %p875_p9 = por %p171_p6, %p57_p1  ;;  %p610_p13 = scmp.lt.s32.totalorder %s787_s20, 2 }
   0xf   : > { %s880_s29 = scalar_select %p48_p7, %s775_s17, %s50_s24  }
  0x10   : > { %s1015_s28 = scalar_select %p875_p9, 1, 0 }
  0x11   : > { %p882_p11 = por %p177_p10, %p63_p3  ;;  %s211_s5 = sand.u32 1, %s775_s17  }
  0x12   : > { %s567_s6 = sshll.u32 %s211_s5, 3  ;;  %s582_s7 = sshll.u32 %s783_s19, 8 }
  0x13   : > { %s1016_s30 = scalar_select %p882_p11, 1, 0 }
  0x14   : > { %s893_s10 = scalar_lea.hbm %s1007_s0, %s582_s7  ;;  %s215_s11 = scalar_lea.vmem [#allocation4], %s567_s6 }
  0x15   : > { %s224_s12 = sshll.u32 %s215_s11, 4  ;;  %p899_p0 = pnand %p610_p13, %p865_p4  ;;  %s895_s12 = int_to_ptr.vmem [resolvable:$true] %s224_s12 }
  0x16   : > { %s903_s14 = scalar_lea.sflag [#allocation5], %s211_s5  ;;  %s675_s21 = scalar_lea.hbm %s893_s10, 128 }
  0x17   : > { %p676_p1 = scmp.ne.s32.totalorder %s893_s10, %s675_s21  ;;  %p677_p2 = pneg %p899_p0 }
  0x18   : > { %s680_s25 = scalar_lea.hbm %s1007_s0, 512  ;;  %p681_p4 = scmp.lt.u32.totalorder %s893_s10, %s1007_s0 }
  0x19   : > { %p678_p3 = pnand %p677_p2, %p676_p1  ;;  %p682_p6 = scmp.lt.u32.totalorder %s680_s25, %s675_s21 }
  0x1a   : > { %p684_p10 = scmp.lt.u32.totalorder %s675_s21, %s893_s10 }
  0x1b   : > { %p679_p5 = pneg %p678_p3  ;;  %p683_p7 = por %p682_p6, %p681_p4 }
  0x1d   : > { %p685_p13 = por %p684_p10, %p683_p7 }
  0x1f   : > { %p686_p12 = pnand %p685_p13, %p679_p5 }
  0x21   : > { %689 = shalt.err (!%p686_p12)
}
  0x22   : > { %s690_s5 = scalar_lea.vmem %s895_s12, 128  ;;  %s789_s7 = smov [#allocation4]  }
  0x23   : > { %p691_p1 = scmp.ne.s32.totalorder %s895_s12, %s690_s5  ;;  %s695_s8 = sshll.u32 %s789_s7, 4  ;;  %s696_s8 = int_to_ptr.vmem [resolvable:$false] %s695_s8 }
  0x24   : > { %s697_s9 = scalar_lea.vmem %s696_s8, 256  ;;  %p698_p9 = scmp.lt.s32.totalorder %s895_s12, %s696_s8 }
  0x25   : > { %p693_p3 = pnand %p691_p1, %p677_p2  ;;  %p699_p4 = scmp.lt.s32.totalorder %s697_s9, %s690_s5 }
  0x27   : > { %p694_p11 = pneg %p693_p3  ;;  %p700_p6 = por %p699_p4, %p698_p9 }
  0x29   : > { %p701_p7 = pnand %p700_p6, %p694_p11 }
  0x2b   : > { %704 = shalt.err (!%p701_p7)
}
  0x2c   : > { %s790_s11 = smov 128   ;;  %s791_s21 = smov 64  }
  0x2d   : > { %s792_s22 = smov 4   ;;  %p570_p12 = scmp.ge.s32.totalorder %s787_s20, 1 }
  0x2e   : > { %605 = dma.hbm_to_vmem [thread:$0]  (!%p899_p0), %s893_s10, 128, %s895_s12, %s903_s14, %s790_s11, %s791_s21, %s792_s22  }
  0x2f   : > { %p240_p2 = scmp.lt.s32.totalorder %s787_s20, 3 }
  0x31   : > { %p241_p5 = pnand %p570_p12, %p240_p2 }
  0x32   : > { %s934_s24 = sand.u32 (!%p241_p5), 1, %s771_s16  }
  0x33   : > { %244 = sbr.rel (%p241_p5) target bundleno = 464 (0x1d0), region = 36  ;;  %s571_s25 = sshll.u32 (!%p241_p5), %s934_s24, 3 }
  0x34   : > { %s247_s26 = scalar_lea.sflag (!%p241_p5), [#allocation5], %s934_s24  ;;  %s250_s6 = scalar_lea.vmem (!%p241_p5), [#allocation4], %s571_s25 }
  0x3a   : > { %758 = dma.done.wait (%p871_p8), %s247_s26, 128  }
  0x3b   : > { %760 = vsyncadd (%p871_p8), %s247_s26, 4294967168  ;;  %p289_p9 = scmp.lt.s32.totalorder %s779_s18, 1  ;;  %v793_v0 = vmov 0.0   ;;  %v669_v1 = vld [vmem:[%s250_s6] sm:$0xff]   ;;  %vm318_vm0 = vcmask 31744   ;;  %s794_s7 = smov 126  }
  0x3c   : > { %588 = vmatprep.subr.bf16.mxu0 %v793_v0  ;;  %327 = vrot.lane.b32.xlu0 %v669_v1, %s794_s7  ;;  %s795_s8 = smov 124   ;;  %vm796_vm1 = vmmov 0   ;;  %v357_v4 = vld [vmem:[%s1010_s3] sm:$0xff]  ;;  %v797_v5 = vmov 0   ;;  %vm330_vm2 = vcmask 1031168   ;;  %vm342_vm3 = vcmask 1014784  }
  0x3d   : > { %s290_s10 = scalar_select %p289_p9, %s779_s18, 1  ;;  %339 = vrot.lane.b32.xlu1 %v669_v1, %s795_s8  ;;  %589 = vmatpush3.bf16.msra.mxu0 %v669_v1  ;;  %vm337_vm4 = vcmask 1048560   ;;  %vm349_vm5 = vcmask 1048544   ;;  %v353_v12 = vld [vmem:[%s1009_s2] sm:$0xf]  ;;  %vm363_vm6 = vcmask 392192  }
  0x3e   : > { %590 = vmatprep.subr.bf16.mxu0 %v793_v0  ;;  %594 = vmatprep.mubr.msk.bf16.mxu0 %vm796_vm1, %v793_v0  ;;  %s572_s22 = sshll.u32 %s934_s24, 2  ;;  %s579_s25 = sshll.u32 %s779_s18, 6 }
  0x3f   : > { %s583_s12 = sshll.u32 %s290_s10, 3  ;;  %668 = vset.pattern.permute.xlu0 %v797_v5  ;;  %s287_s26 = scalar_lea.vmem [#allocation7], %s572_s22 }
  0x40   : > { %s293_s5 = scalar_lea.vmem %s1008_s1, %s583_s12  ;;  %s434_s6 = sshll.u32 %s287_s26, 4  ;;  %s960_s6 = int_to_ptr.vmem [resolvable:$true] %s434_s6 }
  0x41   : > { %v670_v2 = vld [vmem:[%s293_s5] sm:$0xff]   ;;  %s958_s13 = scalar_lea.hbm %s1011_s4, %s579_s25  ;;  %s418_s14 = scalar_lea.sflag [#allocation6], %s934_s24 }
  0x42   : > { %319 = vst.msk [vmem:[#allocation2] sm:$0xff] %vm318_vm0, %v670_v2  ;;  %s705_s5 = scalar_lea.vmem %s960_s6, 64  ;;  %p1018_p11 = scmp.ne.s32.totalorder %s1015_s28, 0 }
  0x43   : > { %p706_p8 = scmp.ne.s32.totalorder %s960_s6, %s705_s5  ;;  %s798_s18 = smov [#allocation7]  }
  0x45   : > { %p707_p0 = pnand %p706_p8, %p1018_p11 }
  0x47   : > { %p708_p10 = pneg %p707_p0 }
  0x49   : > { %v332_v3 = vld [vmem:[#allocation2] sm:$0xff] }
  0x4a   : > { %334 = vrot.lane.b32.xlu0 %v332_v3, %s794_s7  ;;  %346 = vrot.lane.b32.xlu1 %v332_v3, %s795_s8  ;;  %352 = vst.msk [vmem:[#allocation2] sm:$0xff] %vm318_vm0, %v669_v1  ;;  %s709_s7 = sshll.u32 %s798_s18, 4  ;;  %s710_s7 = int_to_ptr.vmem [resolvable:$false] %s709_s7 }
  0x4b   : > { %s711_s8 = scalar_lea.vmem %s710_s7, 128  ;;  %p712_p13 = scmp.lt.s32.totalorder %s960_s6, %s710_s7 }
  0x4c   : > { %p713_p1 = scmp.lt.s32.totalorder %s711_s8, %s705_s5 }
  0x4e   : > { %360 = vperm.xlu0 %668, %v357_v4   ;;  %p714_p3 = por %p713_p1, %p712_p13 }
  0x50   : > { %p715_p4 = pnand %p714_p3, %p708_p10 }
  0xae   : > { %v328_v6 = vpop.permute.xlu0 %327 }
  0xaf   : > { %v340_v7 = vpop.permute.xlu1 %339  ;;  %331 = vst.msk [vmem:[#allocation3 + $0x8] sm:$0xff] %vm330_vm2, %v328_v6 }
  0xb0   : > { %343 = vst.msk [vmem:[#allocation3 + $0x10] sm:$0xff] %vm342_vm3, %v340_v7 }
  0xbc   : > { %v335_v8 = vpop.permute.xlu0 %334  ;;  %v347_v9 = vpop.permute.xlu1 %346 }
  0xbd   : > { %338 = vst.msk [vmem:[#allocation3 + $0x8] sm:$0xff] %vm337_vm4, %v335_v8 }
  0xbe   : > { %350 = vst.msk [vmem:[#allocation3 + $0x10] sm:$0xff] %vm349_vm5, %v347_v9 }
  0xc4   : > { %v355_v10 = vld [vmem:[#allocation3 + $0x8] sm:$0xff] }
  0xc5   : > { %591 = vmatpush3.bf16.msra.mxu0 %v355_v10  ;;  %v356_v11 = vld [vmem:[#allocation3 + $0x10] sm:$0xff] }
  0xc6   : > { %592 = vmatprep.subr.bf16.mxu0 %v793_v0 }
  0xc9   : > { %593 = vmatpush3.bf16.msra.mxu0 %v356_v11 }
  0xcc   : > { %595 = vmatmul.mubr.msk.bf16.vlgmr.msra.gmra.mrb[0].mxu0 %vm363_vm6, %v353_v12 }
  0xcd   : > { %v361_v13 = vpop.permute.xlu0 %360 }
 0x19f   : > { %v401_v14 = vpop.f32.mrb[0].mxu0 }
 0x1a0   : > { %v402_v15 = vadd.f32 %v401_v14, %v361_v13  ;;  %v596_v16 = vpop.f32.mrb[1].mxu0 }
 0x1a1   : > { %v404_v17 = vpop.f32.mrb[2].mxu0 }
 0x1a2   : > { %v407_v18 = vsub.f32 0.0, %v402_v15  ;;  %v597_v19 = vpop.f32.mrb[3].mxu0 }
 0x1a4   : > { %v408_v20 = vmul.f32 1.442695, %v407_v18 }
 0x1a6   : > { %671 = vpow2.f32 %v408_v20 }
 0x1b0   : > { %v672_v21 = vpop.eup %671 }
 0x1b1   : > { %v410_v22 = vadd.f32 1.0, %v672_v21 }
 0x1b3   : > { %673 = vrcp.f32 %v410_v22 }
 0x1bd   : > { %v674_v23 = vpop.eup %673 }
 0x1be   : > { %v413_v24 = vrot.slane %v674_v23, 4 }
 0x1c0   : > { %v415_v25 = vmul.f32 %v413_v24, %v402_v15 }
 0x1c2   : > { %416 = vst [vmem:[%s287_s26] sm:$0xf] %v415_v25 }
 0x1c3   : > { %718 = shalt.err (!%p715_p4)
}
 0x1c4   : > { %s719_s24 = scalar_lea.hbm %s958_s13, 64  ;;  %s723_s11 = scalar_lea.hbm %s1011_s4, 128 }
 0x1c5   : > { %p720_p6 = scmp.ne.s32.totalorder %s958_s13, %s719_s24  ;;  %p724_p2 = scmp.lt.u32.totalorder %s958_s13, %s1011_s4 }
 0x1c6   : > { %p725_p5 = scmp.lt.u32.totalorder %s723_s11, %s719_s24  ;;  %p727_p8 = scmp.lt.u32.totalorder %s719_s24, %s958_s13 }
 0x1c7   : > { %p721_p7 = pnand %p720_p6, %p1018_p11 }
 0x1c8   : > { %p726_p9 = por %p725_p5, %p724_p2 }
 0x1c9   : > { %p722_p12 = pneg %p721_p7 }
 0x1ca   : > { %p728_p0 = por %p727_p8, %p726_p9 }
 0x1cc   : > { %p729_p10 = pnand %p728_p0, %p722_p12 }
 0x1ce   : > { %732 = shalt.err (!%p729_p10)
}
 0x1cf   : > { %600 = dma.vmem_to_hbm [thread:$0]  (%p1018_p11), %s960_s6, 64, %s958_s13, %s418_s14  }
 0x1d0 PF: > { %s446_s25 = sand.u32 1, %s767_s15   ;;  %p1019_p13 = scmp.ne.s32.totalorder %s1016_s30, 0 }
 0x1d1   : > { %p1020_p1 = scmp.ge.s32.totalorder %s787_s20, 2  ;;  %s447_s26 = scalar_lea.sflag [#allocation6], %s446_s25 }
 0x1d3   : > { %p607_p3 = pnand %p1020_p1, %p1019_p13 }
 0x1d5   : > { %762 = dma.done.wait (!%p607_p3), %s447_s26, 64  }
 0x1d6   : > { %764 = vsyncadd (!%p607_p3), %s447_s26, 4294967232  ;;  %s20_s20 = sadd.s32 1, %s787_s20   ;;  %s1021_s15 = smov %s771_s16 }
 0x1d7   : > { %p17_p4 = scmp.ge.s32.totalorder %s20_s20, 4   ;;  %s1022_s16 = smov %s775_s17 }
 0x1d8   : > { %s1023_s17 = smov %s880_s29  ;;  %s1024_s18 = smov %s783_s19 }
 0x1d9   : > { %s1025_s19 = smov %s1027_s23  ;;  %19 = sbr.rel (!%p17_p4) target bundleno = 6 (0x6), region = 94 }
 0x1e0   :  { %452 = vsyncpa [#allocation5], 1 }
 0x1e1   :  { %454 = vsyncpa [#allocation5 + $0x1], 1 }
 0x1e2   :  { %455 = vsyncpa [#allocation6], 1 }
 0x1e3   :  { %457 = vsyncpa [#allocation6 + $0x1], 1 }

</bundles_post_ra>
